<compile_context>
chip_gen: v7x
topology: tpu7x:2x2x1
jax: 0.10.0
libtpu: 0.0.40
codegen_flags: <defaults>
</compile_context>

<pallas_src>
import functools

import jax
import jax.numpy as jnp
import numpy as np
from jax import lax
from jax.experimental import pallas as pl
from jax.experimental.pallas import tpu as pltpu


# ----------------------------------------------------------------------------
# Fused kernel: one grid step per batch element, all heads processed inside.
# ----------------------------------------------------------------------------
def _fused_attention_kernel(x_ref, gamma_ref, w_qkvg_ref, b_packed_ref, w_out_ref,
                            out_ref, v_ref, *, heads, dim_head, rms_scale,
                            attn_scale):
    n, dim = x_ref.shape
    hd = heads * dim_head

    # ---- RMSNorm (F.normalize * scale * gamma), all in f32 ----
    x = x_ref[...].astype(jnp.float32)                       # (n, dim)
    l2 = jnp.sqrt(jnp.sum(x * x, axis=-1, keepdims=True))
    xn = x / jnp.maximum(l2, 1e-12)
    xn = xn * rms_scale * gamma_ref[...]                     # (n, dim)

    # ---- single packed projection: [q | k | v | gate_logits] ----
    # w_qkvg: (dim, 3*h*d + heads); bias row is zero on the qkv columns.
    qkvg = jnp.dot(xn, w_qkvg_ref[...],
                   preferred_element_type=jnp.float32) + b_packed_ref[...]

    # sigmoid of all gate logits at once: (n, heads)
    gates = 1.0 / (1.0 + jnp.exp(-qkvg[:, 3 * hd:]))

    w_out = w_out_ref[...]                                    # (h*d, dim)
    acc = jnp.zeros((n, dim), jnp.float32)

    # static per-head loop (heads is a Python int -> fully unrolled)
    for hi in range(heads):
        q = qkvg[:, hi * dim_head:(hi + 1) * dim_head]                    # (n, d)
        k = qkvg[:, hd + hi * dim_head: hd + (hi + 1) * dim_head]         # (n, d)
        v = qkvg[:, 2 * hd + hi * dim_head: 2 * hd + (hi + 1) * dim_head]  # (n, d)

        # scores: contract last dims of q and k directly (no k.T transpose)
        s = lax.dot_general(q, k, (((1,), (1,)), ((), ())),
                            preferred_element_type=jnp.float32) * attn_scale
        s = s - jnp.max(s, axis=-1, keepdims=True)
        p = jnp.exp(s)
        p = p * pl.reciprocal(jnp.sum(p, axis=-1, keepdims=True), approx=True)

        o = jnp.dot(p, v, preferred_element_type=jnp.float32)             # (n, d)
        o = o * gates[:, hi:hi + 1]                                       # gating

        # fold output projection per head: sum_h  o_h @ W_out[h*d:(h+1)*d, :]
        acc = acc + jnp.dot(o, w_out[hi * dim_head:(hi + 1) * dim_head, :],
                            preferred_element_type=jnp.float32)

        # orig_v (pre-mix value) in (h, n, d) layout
        v_ref[hi] = v.astype(v_ref.dtype)

    out_ref[...] = acc.astype(out_ref.dtype)


def fused_attention_call(x, gamma, w_qkvg, b_packed, w_out, *, heads, dim_head,
                         rms_scale, attn_scale):
    b, n, dim = x.shape
    hd = heads * dim_head
    cols = w_qkvg.shape[1]                 # 3*h*d + heads

    kernel = functools.partial(_fused_attention_kernel, heads=heads,
                               dim_head=dim_head, rms_scale=rms_scale,
                               attn_scale=attn_scale)
    return pl.pallas_call(
        kernel,
        out_shape=(
            jax.ShapeDtypeStruct((b, n, dim), x.dtype),            # out
            jax.ShapeDtypeStruct((b, heads, n, dim_head), x.dtype),  # orig_v
        ),
        grid_spec=pltpu.PrefetchScalarGridSpec(
            num_scalar_prefetch=0,
            grid=(b,),
            in_specs=[
                pl.BlockSpec((None, n, dim), lambda i: (i, 0, 0)),
                pl.BlockSpec((1, dim), lambda i: (0, 0)),
                pl.BlockSpec((dim, cols), lambda i: (0, 0)),
                pl.BlockSpec((1, cols), lambda i: (0, 0)),
                pl.BlockSpec((hd, dim), lambda i: (0, 0)),
            ],
            out_specs=[
                pl.BlockSpec((None, n, dim), lambda i: (i, 0, 0)),
                pl.BlockSpec((None, heads, n, dim_head), lambda i: (i, 0, 0, 0)),
            ],
        ),
        # keep a 2-wide parallel batch axis so v7x can shard across its 2 TCs
        compiler_params=pltpu.CompilerParams(dimension_semantics=("parallel",)),
    )(x, gamma, w_qkvg, b_packed, w_out)


# ----------------------------------------------------------------------------
# Full Attention.forward
# ----------------------------------------------------------------------------
def attention_forward(x, params, *, heads, dim_head):
    """x: (b, n, dim).  Returns (out, orig_v) matching the PyTorch module."""
    b, n, dim = x.shape
    hd = heads * dim_head
    rms_scale = float(dim ** 0.5)
    attn_scale = float(dim_head ** -0.5)

    # pack qkv + gate weights into one matmul; bias is zero on qkv columns
    w_qkvg = jnp.concatenate([params["w_qkv"], params["w_gates"]], axis=1)
    b_packed = jnp.concatenate(
        [jnp.zeros((3 * hd,), params["b_gates"].dtype), params["b_gates"]]
    ).reshape(1, 3 * hd + heads)

    out, orig_v = fused_attention_call(
        x,
        params["gamma"].reshape(1, dim),
        w_qkvg,
        b_packed,
        params["w_out"],
        heads=heads, dim_head=dim_head,
        rms_scale=rms_scale, attn_scale=attn_scale,
    )
    return out, orig_v


# ----------------------------------------------------------------------------
# Pure-JAX reference (for correctness check)
# ----------------------------------------------------------------------------
def attention_reference(x, params, *, heads, dim_head):
    b, n, dim = x.shape
    l2 = jnp.sqrt(jnp.sum(x * x, axis=-1, keepdims=True))
    xn = x / jnp.maximum(l2, 1e-12) * (dim ** 0.5) * params["gamma"]
    qkv = xn @ params["w_qkv"]
    gates = xn @ params["w_gates"] + params["b_gates"]
    qkv = qkv.reshape(b, n, 3, heads, dim_head).transpose(2, 0, 3, 1, 4)
    q, k, v = qkv[0], qkv[1], qkv[2]
    s = jnp.einsum("bhqd,bhkd->bhqk", q, k) * (dim_head ** -0.5)
    p = jax.nn.softmax(s, axis=-1)
    out = jnp.einsum("bhqk,bhkd->bhqd", p, v)
    out = out * jax.nn.sigmoid(gates.transpose(0, 2, 1))[..., None]
    out = out.transpose(0, 2, 1, 3).reshape(b, n, heads * dim_head)
    return out @ params["w_out"], v


if __name__ == "__main__":
    # small shapes consistent with the module
    batch, seq, dim = 2, 8, 32
    heads, dim_head = 4, 16
    dim_inner = heads * dim_head

    key = jax.random.PRNGKey(0)
    kx, k1, k2, k3, k4 = jax.random.split(key, 5)

    x = jax.random.normal(kx, (batch, seq, dim), dtype=jnp.float32)

    # deterministic synthetic parameters (nn.Linear stores (out,in); we keep (in,out))
    params = {
        "gamma": jnp.ones((dim,), dtype=jnp.float32),                                # RMSNorm.gamma
        "w_qkv": jax.random.normal(k1, (dim, dim_inner * 3), jnp.float32) * 0.05,    # to_qkv (no bias)
        "w_gates": jax.random.normal(k2, (dim, heads), jnp.float32) * 0.05,          # to_gates weight
        "b_gates": jax.random.normal(k3, (heads,), jnp.float32) * 0.05,              # to_gates bias
        "w_out": jax.random.normal(k4, (dim_inner, dim), jnp.float32) * 0.05,        # to_out (no bias)
    }

    out, orig_v = attention_forward(x, params, heads=heads, dim_head=dim_head)
    jax.block_until_ready(out)
    jax.block_until_ready(orig_v)

    ref_out, ref_v = attention_reference(x, params, heads=heads, dim_head=dim_head)
    # tolerance accounts for the EUP approx reciprocal in the softmax denominator
    np.testing.assert_allclose(np.asarray(out), np.asarray(ref_out), rtol=2e-3, atol=2e-3)
    np.testing.assert_allclose(np.asarray(orig_v), np.asarray(ref_v), rtol=2e-3, atol=2e-3)

    print("KERNEL_OK")
</pallas_src>

<mosaic_0001>
module attributes {stable_mosaic.version = 11 : i64} {
  func.func @_fused_attention_kernel(%arg0: i32, %arg1: memref<1x8x32xf32, #tpu.memory_space<vmem>>, %arg2: memref<1x32xf32, #tpu.memory_space<vmem>>, %arg3: memref<32x196xf32, #tpu.memory_space<vmem>>, %arg4: memref<1x196xf32, #tpu.memory_space<vmem>>, %arg5: memref<64x32xf32, #tpu.memory_space<vmem>>, %arg6: memref<1x8x32xf32, #tpu.memory_space<vmem>>, %arg7: memref<1x4x8x16xf32, #tpu.memory_space<vmem>>) attributes {dimension_semantics = [#tpu.dimension_semantics<parallel>], iteration_bounds = array<i64: 2>, scalar_prefetch = 0 : i64, scratch_operands = 0 : i64, tpu.core_type = #tpu.core_type<tc>, window_params = [{transform_indices = @transform_0, window_bounds = array<i64: 1, 8, 32>}, {pipeline_mode = #tpu.pipeline_mode<synchronous>, transform_indices = @transform_1, window_bounds = array<i64: 1, 32>}, {pipeline_mode = #tpu.pipeline_mode<synchronous>, transform_indices = @transform_2, window_bounds = array<i64: 32, 196>}, {pipeline_mode = #tpu.pipeline_mode<synchronous>, transform_indices = @transform_3, window_bounds = array<i64: 1, 196>}, {pipeline_mode = #tpu.pipeline_mode<synchronous>, transform_indices = @transform_4, window_bounds = array<i64: 64, 32>}, {transform_indices = @transform_5, window_bounds = array<i64: 1, 8, 32>}, {transform_indices = @transform_6, window_bounds = array<i64: 1, 4, 8, 16>}]} {
    %c0 = arith.constant 0 : index
    %c0_0 = arith.constant 0 : index
    %c0_1 = arith.constant 0 : index
    %0 = vector.load %arg1[%c0, %c0_0, %c0_1] : memref<1x8x32xf32, #tpu.memory_space<vmem>>, vector<1x8x32xf32>
    %1 = vector.shape_cast %0 : vector<1x8x32xf32> to vector<8x32xf32>
    %2 = arith.mulf %1, %1 : vector<8x32xf32>
    %cst = arith.constant dense<0.000000e+00> : vector<8xf32>
    %3 = vector.multi_reduction <add>, %2, %cst [1] : vector<8x32xf32> to vector<8xf32>
    %4 = vector.shape_cast %3 : vector<8xf32> to vector<8x1xf32>
    %5 = math.sqrt %4 : vector<8x1xf32>
    %cst_2 = arith.constant 9.99999996E-13 : f32
    %6 = vector.broadcast %cst_2 : f32 to vector<8x1xf32>
    %7 = arith.maximumf %5, %6 : vector<8x1xf32>
    %8 = vector.broadcast %7 : vector<8x1xf32> to vector<8x32xf32>
    %9 = arith.divf %1, %8 : vector<8x32xf32>
    %cst_3 = arith.constant 5.65685415 : f32
    %10 = vector.broadcast %cst_3 : f32 to vector<8x32xf32>
    %11 = arith.mulf %9, %10 : vector<8x32xf32>
    %c0_4 = arith.constant 0 : index
    %c0_5 = arith.constant 0 : index
    %12 = vector.load %arg2[%c0_4, %c0_5] : memref<1x32xf32, #tpu.memory_space<vmem>>, vector<1x32xf32>
    %13 = vector.broadcast %12 : vector<1x32xf32> to vector<8x32xf32>
    %14 = arith.mulf %11, %13 : vector<8x32xf32>
    %c0_6 = arith.constant 0 : index
    %c0_7 = arith.constant 0 : index
    %15 = vector.load %arg3[%c0_6, %c0_7] : memref<32x196xf32, #tpu.memory_space<vmem>>, vector<32x196xf32>
    %cst_8 = arith.constant dense<0.000000e+00> : vector<8x196xf32>
    %16 = tpu.matmul %14, %15, %cst_8 {dimension_numbers = #tpu.dot_dimension_numbers<[1], [0], [0], [1], [0, 0, 1, 1], [], []>} : vector<8x32xf32>, vector<32x196xf32>, vector<8x196xf32> -> vector<8x196xf32>
    %c0_9 = arith.constant 0 : index
    %c0_10 = arith.constant 0 : index
    %17 = vector.load %arg4[%c0_9, %c0_10] : memref<1x196xf32, #tpu.memory_space<vmem>>, vector<1x196xf32>
    %18 = vector.broadcast %17 : vector<1x196xf32> to vector<8x196xf32>
    %19 = arith.addf %16, %18 : vector<8x196xf32>
    %20 = vector.extract_strided_slice %19 {offsets = [0, 192], sizes = [8, 4], strides = [1, 1]} : vector<8x196xf32> to vector<8x4xf32>
    %cst_11 = arith.constant 0.000000e+00 : f32
    %21 = vector.broadcast %cst_11 : f32 to vector<8x4xf32>
    %22 = arith.subf %21, %20 : vector<8x4xf32>
    %23 = math.exp %22 : vector<8x4xf32>
    %cst_12 = arith.constant 1.000000e+00 : f32
    %24 = vector.broadcast %cst_12 : f32 to vector<8x4xf32>
    %25 = arith.addf %24, %23 : vector<8x4xf32>
    %cst_13 = arith.constant 1.000000e+00 : f32
    %26 = vector.broadcast %cst_13 : f32 to vector<8x4xf32>
    %27 = arith.divf %26, %25 : vector<8x4xf32>
    %c0_14 = arith.constant 0 : index
    %c0_15 = arith.constant 0 : index
    %28 = vector.load %arg5[%c0_14, %c0_15] : memref<64x32xf32, #tpu.memory_space<vmem>>, vector<64x32xf32>
    %cst_16 = arith.constant 0.000000e+00 : f32
    %29 = vector.broadcast %cst_16 : f32 to vector<8x32xf32>
    %30 = vector.extract_strided_slice %19 {offsets = [0, 0], sizes = [8, 16], strides = [1, 1]} : vector<8x196xf32> to vector<8x16xf32>
    %31 = vector.extract_strided_slice %19 {offsets = [0, 64], sizes = [8, 16], strides = [1, 1]} : vector<8x196xf32> to vector<8x16xf32>
    %32 = vector.extract_strided_slice %19 {offsets = [0, 128], sizes = [8, 16], strides = [1, 1]} : vector<8x196xf32> to vector<8x16xf32>
    %cst_17 = arith.constant dense<0.000000e+00> : vector<8x8xf32>
    %33 = tpu.matmul %30, %31, %cst_17 {dimension_numbers = #tpu.dot_dimension_numbers<[1], [1], [0], [0], [0, 0, 1, 0], [], []>} : vector<8x16xf32>, vector<8x16xf32>, vector<8x8xf32> -> vector<8x8xf32>
    %cst_18 = arith.constant 2.500000e-01 : f32
    %34 = vector.broadcast %cst_18 : f32 to vector<8x8xf32>
    %35 = arith.mulf %33, %34 : vector<8x8xf32>
    %cst_19 = arith.constant dense<0xFF800000> : vector<8xf32>
    %36 = vector.multi_reduction <maximumf>, %35, %cst_19 [1] : vector<8x8xf32> to vector<8xf32>
    %37 = vector.shape_cast %36 : vector<8xf32> to vector<8x1xf32>
    %38 = vector.broadcast %37 : vector<8x1xf32> to vector<8x8xf32>
    %39 = arith.subf %35, %38 : vector<8x8xf32>
    %40 = math.exp %39 : vector<8x8xf32>
    %cst_20 = arith.constant dense<0.000000e+00> : vector<8xf32>
    %41 = vector.multi_reduction <add>, %40, %cst_20 [1] : vector<8x8xf32> to vector<8xf32>
    %42 = vector.shape_cast %41 : vector<8xf32> to vector<8x1xf32>
    %43 = tpu.reciprocal %42 {approx = true} : vector<8x1xf32> -> vector<8x1xf32>
    %44 = vector.broadcast %43 : vector<8x1xf32> to vector<8x8xf32>
    %45 = arith.mulf %40, %44 : vector<8x8xf32>
    %cst_21 = arith.constant dense<0.000000e+00> : vector<8x16xf32>
    %46 = tpu.matmul %45, %32, %cst_21 {dimension_numbers = #tpu.dot_dimension_numbers<[1], [0], [0], [1], [0, 0, 1, 1], [], []>} : vector<8x8xf32>, vector<8x16xf32>, vector<8x16xf32> -> vector<8x16xf32>
    %47 = vector.extract_strided_slice %27 {offsets = [0, 0], sizes = [8, 1], strides = [1, 1]} : vector<8x4xf32> to vector<8x1xf32>
    %48 = vector.broadcast %47 : vector<8x1xf32> to vector<8x16xf32>
    %49 = arith.mulf %46, %48 : vector<8x16xf32>
    %50 = vector.extract_strided_slice %28 {offsets = [0, 0], sizes = [16, 32], strides = [1, 1]} : vector<64x32xf32> to vector<16x32xf32>
    %cst_22 = arith.constant dense<0.000000e+00> : vector<8x32xf32>
    %51 = tpu.matmul %49, %50, %cst_22 {dimension_numbers = #tpu.dot_dimension_numbers<[1], [0], [0], [1], [0, 0, 1, 1], [], []>} : vector<8x16xf32>, vector<16x32xf32>, vector<8x32xf32> -> vector<8x32xf32>
    %52 = arith.addf %29, %51 : vector<8x32xf32>
    %c0_23 = arith.constant 0 : index
    %c0_24 = arith.constant 0 : index
    %c0_25 = arith.constant 0 : index
    %c0_26 = arith.constant 0 : index
    %53 = vector.load %arg7[%c0_23, %c0_24, %c0_25, %c0_26] : memref<1x4x8x16xf32, #tpu.memory_space<vmem>>, vector<1x1x8x16xf32>
    %54 = vector.shape_cast %53 : vector<1x1x8x16xf32> to vector<8x16xf32>
    %55 = vector.shape_cast %32 : vector<8x16xf32> to vector<1x1x8x16xf32>
    tpu.vector_store %arg7[%c0_23, %c0_24, %c0_25, %c0_26], %55 {strides = array<i32>} : memref<1x4x8x16xf32, #tpu.memory_space<vmem>>, vector<1x1x8x16xf32>,
    %56 = vector.extract_strided_slice %19 {offsets = [0, 16], sizes = [8, 16], strides = [1, 1]} : vector<8x196xf32> to vector<8x16xf32>
    %57 = vector.extract_strided_slice %19 {offsets = [0, 80], sizes = [8, 16], strides = [1, 1]} : vector<8x196xf32> to vector<8x16xf32>
    %58 = vector.extract_strided_slice %19 {offsets = [0, 144], sizes = [8, 16], strides = [1, 1]} : vector<8x196xf32> to vector<8x16xf32>
    %cst_27 = arith.constant dense<0.000000e+00> : vector<8x8xf32>
    %59 = tpu.matmul %56, %57, %cst_27 {dimension_numbers = #tpu.dot_dimension_numbers<[1], [1], [0], [0], [0, 0, 1, 0], [], []>} : vector<8x16xf32>, vector<8x16xf32>, vector<8x8xf32> -> vector<8x8xf32>
    %cst_28 = arith.constant 2.500000e-01 : f32
    %60 = vector.broadcast %cst_28 : f32 to vector<8x8xf32>
    %61 = arith.mulf %59, %60 : vector<8x8xf32>
    %cst_29 = arith.constant dense<0xFF800000> : vector<8xf32>
    %62 = vector.multi_reduction <maximumf>, %61, %cst_29 [1] : vector<8x8xf32> to vector<8xf32>
    %63 = vector.shape_cast %62 : vector<8xf32> to vector<8x1xf32>
    %64 = vector.broadcast %63 : vector<8x1xf32> to vector<8x8xf32>
    %65 = arith.subf %61, %64 : vector<8x8xf32>
    %66 = math.exp %65 : vector<8x8xf32>
    %cst_30 = arith.constant dense<0.000000e+00> : vector<8xf32>
    %67 = vector.multi_reduction <add>, %66, %cst_30 [1] : vector<8x8xf32> to vector<8xf32>
    %68 = vector.shape_cast %67 : vector<8xf32> to vector<8x1xf32>
    %69 = tpu.reciprocal %68 {approx = true} : vector<8x1xf32> -> vector<8x1xf32>
    %70 = vector.broadcast %69 : vector<8x1xf32> to vector<8x8xf32>
    %71 = arith.mulf %66, %70 : vector<8x8xf32>
    %cst_31 = arith.constant dense<0.000000e+00> : vector<8x16xf32>
    %72 = tpu.matmul %71, %58, %cst_31 {dimension_numbers = #tpu.dot_dimension_numbers<[1], [0], [0], [1], [0, 0, 1, 1], [], []>} : vector<8x8xf32>, vector<8x16xf32>, vector<8x16xf32> -> vector<8x16xf32>
    %73 = vector.extract_strided_slice %27 {offsets = [0, 1], sizes = [8, 1], strides = [1, 1]} : vector<8x4xf32> to vector<8x1xf32>
    %74 = vector.broadcast %73 : vector<8x1xf32> to vector<8x16xf32>
    %75 = arith.mulf %72, %74 : vector<8x16xf32>
    %76 = vector.extract_strided_slice %28 {offsets = [16, 0], sizes = [16, 32], strides = [1, 1]} : vector<64x32xf32> to vector<16x32xf32>
    %cst_32 = arith.constant dense<0.000000e+00> : vector<8x32xf32>
    %77 = tpu.matmul %75, %76, %cst_32 {dimension_numbers = #tpu.dot_dimension_numbers<[1], [0], [0], [1], [0, 0, 1, 1], [], []>} : vector<8x16xf32>, vector<16x32xf32>, vector<8x32xf32> -> vector<8x32xf32>
    %78 = arith.addf %52, %77 : vector<8x32xf32>
    %c0_33 = arith.constant 0 : index
    %c1 = arith.constant 1 : index
    %c0_34 = arith.constant 0 : index
    %c0_35 = arith.constant 0 : index
    %79 = vector.load %arg7[%c0_33, %c1, %c0_34, %c0_35] : memref<1x4x8x16xf32, #tpu.memory_space<vmem>>, vector<1x1x8x16xf32>
    %80 = vector.shape_cast %79 : vector<1x1x8x16xf32> to vector<8x16xf32>
    %81 = vector.shape_cast %58 : vector<8x16xf32> to vector<1x1x8x16xf32>
    tpu.vector_store %arg7[%c0_33, %c1, %c0_34, %c0_35], %81 {strides = array<i32>} : memref<1x4x8x16xf32, #tpu.memory_space<vmem>>, vector<1x1x8x16xf32>,
    %82 = vector.extract_strided_slice %19 {offsets = [0, 32], sizes = [8, 16], strides = [1, 1]} : vector<8x196xf32> to vector<8x16xf32>
    %83 = vector.extract_strided_slice %19 {offsets = [0, 96], sizes = [8, 16], strides = [1, 1]} : vector<8x196xf32> to vector<8x16xf32>
    %84 = vector.extract_strided_slice %19 {offsets = [0, 160], sizes = [8, 16], strides = [1, 1]} : vector<8x196xf32> to vector<8x16xf32>
    %cst_36 = arith.constant dense<0.000000e+00> : vector<8x8xf32>
    %85 = tpu.matmul %82, %83, %cst_36 {dimension_numbers = #tpu.dot_dimension_numbers<[1], [1], [0], [0], [0, 0, 1, 0], [], []>} : vector<8x16xf32>, vector<8x16xf32>, vector<8x8xf32> -> vector<8x8xf32>
    %cst_37 = arith.constant 2.500000e-01 : f32
    %86 = vector.broadcast %cst_37 : f32 to vector<8x8xf32>
    %87 = arith.mulf %85, %86 : vector<8x8xf32>
    %cst_38 = arith.constant dense<0xFF800000> : vector<8xf32>
    %88 = vector.multi_reduction <maximumf>, %87, %cst_38 [1] : vector<8x8xf32> to vector<8xf32>
    %89 = vector.shape_cast %88 : vector<8xf32> to vector<8x1xf32>
    %90 = vector.broadcast %89 : vector<8x1xf32> to vector<8x8xf32>
    %91 = arith.subf %87, %90 : vector<8x8xf32>
    %92 = math.exp %91 : vector<8x8xf32>
    %cst_39 = arith.constant dense<0.000000e+00> : vector<8xf32>
    %93 = vector.multi_reduction <add>, %92, %cst_39 [1] : vector<8x8xf32> to vector<8xf32>
    %94 = vector.shape_cast %93 : vector<8xf32> to vector<8x1xf32>
    %95 = tpu.reciprocal %94 {approx = true} : vector<8x1xf32> -> vector<8x1xf32>
    %96 = vector.broadcast %95 : vector<8x1xf32> to vector<8x8xf32>
    %97 = arith.mulf %92, %96 : vector<8x8xf32>
    %cst_40 = arith.constant dense<0.000000e+00> : vector<8x16xf32>
    %98 = tpu.matmul %97, %84, %cst_40 {dimension_numbers = #tpu.dot_dimension_numbers<[1], [0], [0], [1], [0, 0, 1, 1], [], []>} : vector<8x8xf32>, vector<8x16xf32>, vector<8x16xf32> -> vector<8x16xf32>
    %99 = vector.extract_strided_slice %27 {offsets = [0, 2], sizes = [8, 1], strides = [1, 1]} : vector<8x4xf32> to vector<8x1xf32>
    %100 = vector.broadcast %99 : vector<8x1xf32> to vector<8x16xf32>
    %101 = arith.mulf %98, %100 : vector<8x16xf32>
    %102 = vector.extract_strided_slice %28 {offsets = [32, 0], sizes = [16, 32], strides = [1, 1]} : vector<64x32xf32> to vector<16x32xf32>
    %cst_41 = arith.constant dense<0.000000e+00> : vector<8x32xf32>
    %103 = tpu.matmul %101, %102, %cst_41 {dimension_numbers = #tpu.dot_dimension_numbers<[1], [0], [0], [1], [0, 0, 1, 1], [], []>} : vector<8x16xf32>, vector<16x32xf32>, vector<8x32xf32> -> vector<8x32xf32>
    %104 = arith.addf %78, %103 : vector<8x32xf32>
    %c0_42 = arith.constant 0 : index
    %c2 = arith.constant 2 : index
    %c0_43 = arith.constant 0 : index
    %c0_44 = arith.constant 0 : index
    %105 = vector.load %arg7[%c0_42, %c2, %c0_43, %c0_44] : memref<1x4x8x16xf32, #tpu.memory_space<vmem>>, vector<1x1x8x16xf32>
    %106 = vector.shape_cast %105 : vector<1x1x8x16xf32> to vector<8x16xf32>
    %107 = vector.shape_cast %84 : vector<8x16xf32> to vector<1x1x8x16xf32>
    tpu.vector_store %arg7[%c0_42, %c2, %c0_43, %c0_44], %107 {strides = array<i32>} : memref<1x4x8x16xf32, #tpu.memory_space<vmem>>, vector<1x1x8x16xf32>,
    %108 = vector.extract_strided_slice %19 {offsets = [0, 48], sizes = [8, 16], strides = [1, 1]} : vector<8x196xf32> to vector<8x16xf32>
    %109 = vector.extract_strided_slice %19 {offsets = [0, 112], sizes = [8, 16], strides = [1, 1]} : vector<8x196xf32> to vector<8x16xf32>
    %110 = vector.extract_strided_slice %19 {offsets = [0, 176], sizes = [8, 16], strides = [1, 1]} : vector<8x196xf32> to vector<8x16xf32>
    %cst_45 = arith.constant dense<0.000000e+00> : vector<8x8xf32>
    %111 = tpu.matmul %108, %109, %cst_45 {dimension_numbers = #tpu.dot_dimension_numbers<[1], [1], [0], [0], [0, 0, 1, 0], [], []>} : vector<8x16xf32>, vector<8x16xf32>, vector<8x8xf32> -> vector<8x8xf32>
    %cst_46 = arith.constant 2.500000e-01 : f32
    %112 = vector.broadcast %cst_46 : f32 to vector<8x8xf32>
    %113 = arith.mulf %111, %112 : vector<8x8xf32>
    %cst_47 = arith.constant dense<0xFF800000> : vector<8xf32>
    %114 = vector.multi_reduction <maximumf>, %113, %cst_47 [1] : vector<8x8xf32> to vector<8xf32>
    %115 = vector.shape_cast %114 : vector<8xf32> to vector<8x1xf32>
    %116 = vector.broadcast %115 : vector<8x1xf32> to vector<8x8xf32>
    %117 = arith.subf %113, %116 : vector<8x8xf32>
    %118 = math.exp %117 : vector<8x8xf32>
    %cst_48 = arith.constant dense<0.000000e+00> : vector<8xf32>
    %119 = vector.multi_reduction <add>, %118, %cst_48 [1] : vector<8x8xf32> to vector<8xf32>
    %120 = vector.shape_cast %119 : vector<8xf32> to vector<8x1xf32>
    %121 = tpu.reciprocal %120 {approx = true} : vector<8x1xf32> -> vector<8x1xf32>
    %122 = vector.broadcast %121 : vector<8x1xf32> to vector<8x8xf32>
    %123 = arith.mulf %118, %122 : vector<8x8xf32>
    %cst_49 = arith.constant dense<0.000000e+00> : vector<8x16xf32>
    %124 = tpu.matmul %123, %110, %cst_49 {dimension_numbers = #tpu.dot_dimension_numbers<[1], [0], [0], [1], [0, 0, 1, 1], [], []>} : vector<8x8xf32>, vector<8x16xf32>, vector<8x16xf32> -> vector<8x16xf32>
    %125 = vector.extract_strided_slice %27 {offsets = [0, 3], sizes = [8, 1], strides = [1, 1]} : vector<8x4xf32> to vector<8x1xf32>
    %126 = vector.broadcast %125 : vector<8x1xf32> to vector<8x16xf32>
    %127 = arith.mulf %124, %126 : vector<8x16xf32>
    %128 = vector.extract_strided_slice %28 {offsets = [48, 0], sizes = [16, 32], strides = [1, 1]} : vector<64x32xf32> to vector<16x32xf32>
    %cst_50 = arith.constant dense<0.000000e+00> : vector<8x32xf32>
    %129 = tpu.matmul %127, %128, %cst_50 {dimension_numbers = #tpu.dot_dimension_numbers<[1], [0], [0], [1], [0, 0, 1, 1], [], []>} : vector<8x16xf32>, vector<16x32xf32>, vector<8x32xf32> -> vector<8x32xf32>
    %130 = arith.addf %104, %129 : vector<8x32xf32>
    %c0_51 = arith.constant 0 : index
    %c3 = arith.constant 3 : index
    %c0_52 = arith.constant 0 : index
    %c0_53 = arith.constant 0 : index
    %131 = vector.load %arg7[%c0_51, %c3, %c0_52, %c0_53] : memref<1x4x8x16xf32, #tpu.memory_space<vmem>>, vector<1x1x8x16xf32>
    %132 = vector.shape_cast %131 : vector<1x1x8x16xf32> to vector<8x16xf32>
    %133 = vector.shape_cast %110 : vector<8x16xf32> to vector<1x1x8x16xf32>
    tpu.vector_store %arg7[%c0_51, %c3, %c0_52, %c0_53], %133 {strides = array<i32>} : memref<1x4x8x16xf32, #tpu.memory_space<vmem>>, vector<1x1x8x16xf32>,
    %c0_54 = arith.constant 0 : index
    %c0_55 = arith.constant 0 : index
    %c0_56 = arith.constant 0 : index
    %134 = vector.load %arg6[%c0_54, %c0_55, %c0_56] : memref<1x8x32xf32, #tpu.memory_space<vmem>>, vector<1x8x32xf32>
    %135 = vector.shape_cast %134 : vector<1x8x32xf32> to vector<8x32xf32>
    %136 = vector.shape_cast %130 : vector<8x32xf32> to vector<1x8x32xf32>
    tpu.vector_store %arg6[%c0_54, %c0_55, %c0_56], %136 {strides = array<i32>} : memref<1x8x32xf32, #tpu.memory_space<vmem>>, vector<1x8x32xf32>,
    return
  }
  func.func @transform_0(%arg0: i32) -> (i32, i32, i32) {
    %c0_i32 = arith.constant 0 : i32
    %c0_i32_0 = arith.constant 0 : i32
    %c0_i32_1 = arith.constant 0 : i32
    return %arg0, %c0_i32, %c0_i32_0 : i32, i32, i32
  }
  func.func @transform_1(%arg0: i32) -> (i32, i32) {
    %c0_i32 = arith.constant 0 : i32
    %c0_i32_0 = arith.constant 0 : i32
    %c0_i32_1 = arith.constant 0 : i32
    return %c0_i32, %c0_i32_0 : i32, i32
  }
  func.func @transform_2(%arg0: i32) -> (i32, i32) {
    %c0_i32 = arith.constant 0 : i32
    %c0_i32_0 = arith.constant 0 : i32
    %c0_i32_1 = arith.constant 0 : i32
    return %c0_i32, %c0_i32_0 : i32, i32
  }
  func.func @transform_3(%arg0: i32) -> (i32, i32) {
    %c0_i32 = arith.constant 0 : i32
    %c0_i32_0 = arith.constant 0 : i32
    %c0_i32_1 = arith.constant 0 : i32
    return %c0_i32, %c0_i32_0 : i32, i32
  }
  func.func @transform_4(%arg0: i32) -> (i32, i32) {
    %c0_i32 = arith.constant 0 : i32
    %c0_i32_0 = arith.constant 0 : i32
    %c0_i32_1 = arith.constant 0 : i32
    return %c0_i32, %c0_i32_0 : i32, i32
  }
  func.func @transform_5(%arg0: i32) -> (i32, i32, i32) {
    %c0_i32 = arith.constant 0 : i32
    %c0_i32_0 = arith.constant 0 : i32
    %c0_i32_1 = arith.constant 0 : i32
    return %arg0, %c0_i32, %c0_i32_0 : i32, i32, i32
  }
  func.func @transform_6(%arg0: i32) -> (i32, i32, i32, i32) {
    %c0_i32 = arith.constant 0 : i32
    %c0_i32_0 = arith.constant 0 : i32
    %c0_i32_1 = arith.constant 0 : i32
    %c0_i32_2 = arith.constant 0 : i32
    return %arg0, %c0_i32, %c0_i32_0, %c0_i32_1 : i32, i32, i32, i32
  }
}

</mosaic_0001>

<bundles_post_ra>
// kernel: tpu_custom_call.1
= control target key start
LH: loop header
LB: loop body
LE: loop exit
PB: predicated region body
PF: predicated region fallthrough
CT: control target
= control target key end

     0   :  { %12 = vsyncpa [#allocation3], 0  ;;  %s2196_s0 = inlined_call_operand.vmem [shape: f32[2,8,32], index: 0, kind: input, shape index: {}]   ;;  %s2197_s1 = inlined_call_operand.vmem [shape: f32[1,32], index: 1, kind: input, shape index: {}]   ;;  %s2198_s2 = inlined_call_operand.vmem [shape: f32[32,196], index: 2, kind: input, shape index: {}]   ;;  %s2199_s3 = inlined_call_operand.vmem [shape: f32[1,196], index: 3, kind: input, shape index: {}]   ;;  %s2200_s4 = inlined_call_operand.vmem [shape: f32[64,32], index: 4, kind: input, shape index: {}]   ;;  %s2201_s5 = inlined_call_operand.hbm [shape: f32[2,8,32], index: 5, kind: output, shape index: {0}]   ;;  %s2202_s6 = inlined_call_operand.hbm [shape: f32[2,4,8,16], index: 6, kind: output, shape index: {1}]  }
   0x1   :  { %14 = vsyncpa [#allocation3 + $0x1], 0 }
   0x2   :  { %15 = vsyncpa [#allocation5], 0 }
   0x3   :  { %17 = vsyncpa [#allocation5 + $0x1], 0  ;;  %s1899_s21 = smov 0   ;;  %s1901_s22 = smov 0  }
   0x4   :  { %s1903_s23 = smov 0   ;;  %s1905_s24 = smov 0  }
   0x5 LB: > { %s1920_s25 = sadd.s32 4294967295, %s1844_s24   ;;  %s1503_s26 = sadd.s32 4294967294, %s1844_s24   ;;  %s1844_s24 = sphi %s1905_s24, %s2208_s24   ;;  %s1840_s23 = sphi %s1903_s23, %s2207_s23   ;;  %s1836_s22 = sphi %s1901_s22, %s2206_s22   ;;  %s1832_s21 = sphi %s1899_s21, %s2205_s21  }
   0x6   : > { %s1924_s27 = sadd.s32 1, %s1844_s24   ;;  %s140_s28 = sadd.s32 1, %s1840_s23 }
   0x7   : > { %s137_s29 = ssub.s32 %s1844_s24, %s1924_s27  ;;  %p150_p0 = scmp.ne.s32.totalorder %s1840_s23, %s1836_s22 }
   0x8   : > { %p138_p1 = scmp.eq.s32.totalorder %s137_s29, 0  ;;  %p151_p2 = scmp.eq.s32.totalorder %s1920_s25, 1 }
   0x9   : > { %p156_p3 = scmp.ne.s32.totalorder %s1836_s22, %s1832_s21  ;;  %p157_p4 = scmp.eq.s32.totalorder %s1503_s26, 1 }
   0xa   : > { %s1935_s30 = scalar_select %p138_p1, %s1840_s23, %s140_s28  }
   0xb   : > { %p1937_p5 = por %p151_p2, %p150_p0  ;;  %p1941_p6 = por %p157_p4, %p156_p3 }
   0xc   : > { %p1506_p7 = scmp.ge.s32.totalorder %s1844_s24, 1  ;;  %p220_p8 = scmp.lt.s32.totalorder %s1844_s24, 3 }
   0xe   : > { %p221_p9 = pnand %p1506_p7, %p220_p8 }
   0xf   : > { %p254_p10 = scmp.lt.s32.totalorder (!%p221_p9), %s1920_s25, 1  ;;  %vm260_vm0 = vcmask (!%p221_p9), 261120   ;;  %v284_v3 = vld [vmem:[%s2198_s2 + $0x8] sm:$0xff] (!%p221_p9)  ;;  %v286_v4 = vld [vmem:[%s2198_s2 + $0x18] sm:$0xff] (!%p221_p9)  ;;  %v283_v5 = vld [vmem:[%s2198_s2] sm:$0xff] (!%p221_p9)  ;;  %v1846_v10 = vmov (!%p221_p9), 0.0   ;;  %v293_v28 = vlaneseq (!%p221_p9) }
  0x10   : > { %224 = sbr.rel (%p221_p9) target bundleno = 3103 (0xc1f), region = 40  ;;  %v1635_v6 = vpack.c.bf16 (!%p221_p9), %v286_v4, %v284_v3  ;;  %v285_v7 = vld [vmem:[%s2198_s2 + $0x10] sm:$0xff] (!%p221_p9)  ;;  %v288_v8 = vld [vmem:[%s2198_s2 + $0x28] sm:$0xff] (!%p221_p9)  ;;  %v290_v9 = vld [vmem:[%s2198_s2 + $0x38] sm:$0xff] (!%p221_p9)  ;;  %370 = vmatprep.mubr.f32.mxu0 (!%p221_p9), %v1846_v10  ;;  %1567 = vmatprep.subr.mxu1 (!%p221_p9), %v1846_v10  ;;  %vm1847_vm3 = vmmov (!%p221_p9), 0   ;;  %s1991_s19 = sand.u32 (!%p221_p9), 1, %s1836_s22  }
  0x11   : > { %v1637_v11 = vpack.c.bf16 (!%p221_p9), %v285_v7, %v283_v5  ;;  %v1639_v12 = vpack.c.bf16 (!%p221_p9), %v290_v9, %v288_v8  ;;  %v287_v13 = vld [vmem:[%s2198_s2 + $0x20] sm:$0xff] (!%p221_p9)  ;;  %v289_v14 = vld [vmem:[%s2198_s2 + $0x30] sm:$0xff] (!%p221_p9)  ;;  %v294_v29 = vshrl.u32 (!%p221_p9), %v293_v28, 7  ;;  %1569 = vmatprep.mubr.msk.f32.mxu1 (!%p221_p9), %vm1847_vm3, %v1846_v10  ;;  %s1508_s20 = sshll.u32 (!%p221_p9), %s1991_s19, 5  ;;  %vm394_vm4 = vcmask (!%p221_p9), 130048   ;;  %s1848_s26 = smov (!%p221_p9), 64  }
  0x12   : > { %1636 = vmatprep.subr.bf16.mxu0 (!%p221_p9), %v1635_v6  ;;  %v1641_v15 = vpack.c.bf16 (!%p221_p9), %v289_v14, %v287_v13  ;;  %v1510_v25 = vld [vmem:[%s2197_s1] ss:$0 sm:$0xff] (!%p221_p9)  ;;  %s1999_s28 = scalar_lea.vmem (!%p221_p9), [#allocation4], %s1508_s20  ;;  %vm470_vm5 = vcmask (!%p221_p9), 64512   ;;  %s1849_s29 = smov (!%p221_p9), 48   ;;  %v1853_v7 = vmov (!%p221_p9), 65  }
  0x13   : > { %1638 = vmatpush1.bf16.msra.mxu0 (!%p221_p9), %v1637_v11  ;;  %v295_v30 = vsub.s32 (!%p221_p9), 0, %v294_v29  ;;  %v291_v31 = vld [vmem:[%s2199_s3] sm:$0x3] (!%p221_p9)  ;;  %v299_v32 = vsub.s32 (!%p221_p9), 1, %v294_v29  ;;  %s1852_s11 = smov (!%p221_p9), 32   ;;  %1721 = vset.pattern.permute.xlu1 (!%p221_p9), %v1853_v7  ;;  %s1854_s12 = smov (!%p221_p9), 16  }
  0x14   : > { %1640 = vmatprep.subr.bf16.mxu0 (!%p221_p9), %v1639_v12  ;;  %s1538_s18 = sshll.u32 (!%p221_p9), %s1920_s25, 9 }
  0x15   : > { %v296_v33 = vrot.slane (!%p221_p9), %v291_v31, %v295_v30  ;;  %v300_v34 = vrot.slane (!%p221_p9), %v291_v31, %v299_v32 }
  0x17   : > { %s255_s9 = scalar_select %p254_p10, %s1920_s25, 1  ;;  %1642 = vmatpush1.bf16.msra.mxu0 %v1641_v15 }
  0x19   : > { %s1509_s10 = sshll.u32 %s255_s9, 3  ;;  %s1850_s9 = smov 112  }
  0x1a   : > { %s257_s13 = scalar_lea.vmem %s2196_s0, %s1509_s10  ;;  %s1851_s10 = smov 96  }
  0x1b   : > { %v258_v0 = vld [vmem:[%s257_s13] sm:$0xff]  ;;  %s1855_s13 = smov 80  }
  0x1c   : > { %v259_v1 = vmul.f32 %v258_v0, %v258_v0 }
  0x1e   : > { %v261_v2 = vsel %vm260_vm0, %v259_v1, 0.0 }
  0x1f   : > { %262 = vadd.xlane.f32.xlu0 %v261_v2 }
  0xac   : > { %v263_v16 = vpop.xlane.xlu0 %262 }
  0xad   : > { %1726 = vrsqrt.f32 %v263_v16  ;;  %vm266_vm1 = vcmp.eq.f32.partialorder %v263_v16, inf  ;;  %v269_v19 = vand.u32 2147483648, %v263_v16  ;;  %vm268_vm2 = vcmp.eq.f32.partialorder %v263_v16, 0.0 }
  0xb7   : > { %v1727_v17 = vpop.eup %1726 }
  0xb8   : > { %v265_v18 = vmul.f32 %v1727_v17, %v263_v16 }
  0xba   : > { %v267_v20 = vsel %vm266_vm1, %v263_v16, %v265_v18 }
  0xbb   : > { %v270_v21 = vsel %vm268_vm2, %v269_v19, %v267_v20  ;;  %v385_v19 = vld [vmem:[%s2200_s4 + $0x10] sm:$0xff]  ;;  %v386_v20 = vld [vmem:[%s2200_s4 + $0x18] sm:$0xff] }
  0xbc   : > { %v271_v22 = vmax.f32 %v270_v21, 1e-12  ;;  %v1856_v21 = vmov 0.0|0.0  }
  0xbd   : > { %1643 = vmatprep.subr.bf16.mxu0 %v1856_v21 }
  0xbe   : > { %1728 = vrcp.f32 %v271_v22  ;;  %v1644_v22 = vpack.c.bf16 %v386_v20, %v385_v19 }
  0xc8   : > { %v1729_v23 = vpop.eup %1728 }
  0xc9   : > { %v273_v24 = vmul.f32 %v1729_v23, %v258_v0 }
  0xcb   : > { %v274_v26 = vmul.f32 5.656854, %v273_v24  ;;  %v1857_v24 = vmov 66  }
  0xcd   : > { %v282_v27 = vmul.f32 %v1510_v25, %v274_v26 }
  0xcf   : > { %1511 = vmatmul.mubr.msk.f32.vlgmr.msra.gmra.mrb[0].mxu0 %vm260_vm0, %v282_v27 }
  0xd0   : > { %1591 = vmatprep.mubr.msk.f32.mxu0 %vm1847_vm3, %v1846_v10  ;;  %1645 = vmatpush3.bf16.msra.mxu0 %v1644_v22 }
  0xd1   : > { %1646 = vmatprep.subr.bf16.mxu0 %v1856_v21 }
 0x1a2   : > { %v372_v35 = vpop.f32.mrb[0].mxu0 }
 0x1a3   : > { %v1994_v36 = vadd.f32 %v372_v35, %v296_v33  ;;  %v374_v37 = vpop.f32.mrb[1].mxu0 }
 0x1a4   : > { %v1996_v38 = vadd.f32 %v374_v37, %v300_v34 }
 0x1a5   : > { %392 = vrot.lane.b32.xlu0 %v1994_v36, %s1848_s26 }
 0x1a6   : > { %561 = vst.msk [vmem:[%s1999_s28] sm:$0xff] %vm394_vm4, %v1996_v38  ;;  %v377_v8 = vsub.f32 0.0, %v1996_v38 }
 0x1a8   : > { %v378_v11 = vmul.f32 1.442695, %v377_v8 }
 0x217   : > { %v393_v39 = vpop.permute.xlu0 %392 }
 0x218   : > { %1568 = vmatpush3.xpose.msk.msra.mxu1 %vm394_vm4, %v393_v39  ;;  %v1858_v39 = vmov 64  }
 0x219   : > { %1572 = vmatprep.subr.mxu1 %v1846_v10  ;;  %1722 = vset.pattern.permute.xlu0 %v1858_v39 }
 0x21b   : > { %1570 = vmatmul.mubr.msk.f32.vlgmr.msra.gmra.mrb[0].mxu1 %vm394_vm4, %v1994_v36 }
 0x21c   : > { %1573 = vmatpush3.msra.mxu1 %v1996_v38  ;;  %1574 = vmatprep.mubr.msk.f32.mxu1 %vm1847_vm3, %v1846_v10 }
 0x21d   : > { %1577 = vmatprep.subr.mxu1 %v1846_v10 }
 0x2ee   : > { %v465_v40 = vpop.f32.mrb[0].mxu1 }
 0x2ef   : > { %v469_v41 = vmul.f32 0.25, %v465_v40  ;;  %v1571_v42 = vpop.f32.mrb[1].mxu1 }
 0x2f1   : > { %v471_v43 = vsel %vm470_vm5, %v469_v41, -inf }
 0x2f2   : > { %472 = vmax.xlane.f32.xlu1 %v471_v43 }
 0x303   : > { %564 = vrot.lane.b32.xlu1 %v1994_v36, %s1849_s29  ;;  %s2121_s29 = scalar_lea.hbm %s2202_s6, %s1538_s18 }
 0x37f   : > { %v473_v44 = vpop.xlane.xlu1 %472 }
 0x380   : > { %v474_v45 = vsub.f32 %v469_v41, %v473_v44 }
 0x382   : > { %v475_v46 = vmul.f32 1.442695, %v474_v45 }
 0x383   : > { %v565_v49 = vpop.permute.xlu1 %564 }
 0x384   : > { %1730 = vpow2.f32 %v475_v46  ;;  %v383_v46 = vld [vmem:[%s2200_s4] sm:$0xff] }
 0x38e   : > { %v1731_v47 = vpop.eup %1730 }
 0x38f   : > { %v477_v48 = vsel %vm470_vm5, %v1731_v47, 0.0 }
 0x390   : > { %478 = vadd.xlane.f32.xlu1 %v477_v48 }
 0x3a1   : > { %562 = vrot.lane.b32.xlu1 %v1994_v36, %s1850_s9 }
 0x41d   : > { %v479_v50 = vpop.xlane.xlu1 %478 }
 0x41e   : > { %1732 = vrcp.f32 %v479_v50 }
 0x421   : > { %v563_v53 = vpop.permute.xlu1 %562 }
 0x428   : > { %v1733_v51 = vpop.eup %1732 }
 0x429   : > { %v481_v52 = vmul.f32 %v1733_v51, %v1731_v47  ;;  %v384_v47 = vld [vmem:[%s2200_s4 + $0x8] sm:$0xff] }
 0x42a   : > { %v1647_v48 = vpack.c.bf16 %v384_v47, %v383_v46 }
 0x42b   : > { %1575 = vmatmul.mubr.msk.f32.vlgmr.msra.gmra.mrb[2].mxu1 %vm470_vm5, %v481_v52 }
 0x42c   : > { %1578 = vmatpush3.xpose.msk.msra.mxu1 %vm394_vm4, %v565_v49  ;;  %1579 = vmatprep.mubr.msk.f32.mxu1 %vm1847_vm3, %v1846_v10  ;;  %v1859_v49 = vmov 67  }
 0x42d   : > { %1582 = vmatprep.subr.mxu1 %v1846_v10 }
 0x42f   : > { %1580 = vmatmul.mubr.msk.f32.vlgmr.msra.gmra.mrb[4].mxu1 %vm394_vm4, %v563_v53  ;;  %v387_v53 = vld [vmem:[%s2200_s4 + $0x20] sm:$0xff] }
 0x430   : > { %1584 = vmatprep.mubr.msk.f32.mxu1 %vm1847_vm3, %v1846_v10 }
 0x4fe   : > { %v2024_v54 = vpop.f32.mrb[2].mxu1 }
 0x4ff   : > { %v1576_v55 = vpop.f32.mrb[3].mxu1 }
 0x500   : > { %v388_v55 = vld [vmem:[%s2200_s4 + $0x28] sm:$0xff] }
 0x502   : > { %v636_v56 = vpop.f32.mrb[4].mxu1 }
 0x503   : > { %v640_v57 = vmul.f32 0.25, %v636_v56  ;;  %v1581_v58 = vpop.f32.mrb[5].mxu1 }
 0x505   : > { %v641_v59 = vsel %vm470_vm5, %v640_v57, -inf }
 0x506   : > { %642 = vmax.xlane.f32.xlu0 %v641_v59 }
 0x51c   : > { %653 = vrot.lane.b32.xlu0 %v1996_v38, %s1850_s9  ;;  %s1383_s9 = scalar_lea.sflag [#allocation5], %s1991_s19 }
 0x520   : > { %882 = vrot.lane.b32.xlu0 %v1994_v36, %s1851_s10 }
 0x593   : > { %v643_v60 = vpop.xlane.xlu0 %642 }
 0x594   : > { %v644_v61 = vsub.f32 %v640_v57, %v643_v60  ;;  %v1650_v57 = vpack.c.bf16 %v388_v55, %v387_v53 }
 0x596   : > { %v645_v62 = vmul.f32 1.442695, %v644_v61 }
 0x597   : > { %v654_v63 = vpop.permute.xlu0 %653 }
 0x598   : > { %1734 = vpow2.f32 %v645_v62  ;;  %1520 = vst.msk [vmem:[%s1999_s28 + $0x8] sm:$0xff] %vm394_vm4, %v654_v63  ;;  %1583 = vmatpush3.msra.mxu1 %v654_v63 }
 0x599   : > { %1601 = vmatprep.subr.mxu1 %v1846_v10 }
 0x59b   : > { %v883_v6 = vpop.permute.xlu0 %882 }
 0x5a2   : > { %v1735_v0 = vpop.eup %1734 }
 0x5a3   : > { %v647_v1 = vsel %vm470_vm5, %v1735_v0, 0.0 }
 0x5a4   : > { %648 = vadd.xlane.f32.xlu1 %v647_v1 }
 0x5b5   : > { %884 = vrot.lane.b32.xlu1 %v1994_v36, %s1852_s11  ;;  %s1860_s11 = smov [#allocation4]  }
 0x631   : > { %v649_v2 = vpop.xlane.xlu1 %648 }
 0x632   : > { %1736 = vrcp.f32 %v649_v2 }
 0x633   : > { %1738 = vpow2.f32 %v378_v11 }
 0x635   : > { %v885_v5 = vpop.permute.xlu1 %884 }
 0x63c   : > { %v1737_v3 = vpop.eup %1736 }
 0x63d   : > { %v651_v4 = vmul.f32 %v1737_v3, %v1735_v0  ;;  %v1739_v17 = vpop.eup %1738  ;;  %v389_v0 = vld [vmem:[%s2200_s4 + $0x30] sm:$0xff] }
 0x63e   : > { %v380_v18 = vadd.f32 1.0, %v1739_v17 }
 0x63f   : > { %1585 = vmatmul.mubr.msk.f32.vlgmr.msra.gmra.mrb[6].mxu1 %vm470_vm5, %v651_v4 }
 0x640   : > { %1602 = vmatpush3.xpose.msk.msra.mxu1 %vm394_vm4, %v885_v5  ;;  %1603 = vmatprep.mubr.msk.f32.mxu1 %vm1847_vm3, %v1846_v10  ;;  %1740 = vrcp.f32 %v380_v18 }
 0x641   : > { %1606 = vmatprep.subr.mxu1 %v1846_v10 }
 0x643   : > { %1604 = vmatmul.mubr.msk.f32.vlgmr.msra.gmra.mrb[8].mxu1 %vm394_vm4, %v883_v6 }
 0x644   : > { %1608 = vmatprep.mubr.msk.f32.mxu1 %vm1847_vm3, %v1846_v10 }
 0x64a   : > { %v2055_v23 = vpop.eup %1740 }
 0x712   : > { %v725_v9 = vpop.f32.mrb[6].mxu1 }
 0x713   : > { %v1586_v12 = vpop.f32.mrb[7].mxu1 }
 0x716   : > { %v956_v13 = vpop.f32.mrb[8].mxu1 }
 0x717   : > { %v960_v14 = vmul.f32 0.25, %v956_v13  ;;  %v1605_v15 = vpop.f32.mrb[9].mxu1 }
 0x719   : > { %v961_v16 = vsel %vm470_vm5, %v960_v14, -inf }
 0x71a   : > { %962 = vmax.xlane.f32.xlu1 %v961_v16 }
 0x72b   : > { %1131 = vrot.lane.b32.xlu1 %v1994_v36, %s1854_s12  ;;  %s1754_s12 = sshll.u32 %s1860_s11, 4  ;;  %s1755_s12 = int_to_ptr.vmem [resolvable:$false] %s1754_s12 }
 0x72f   : > { %1129 = vrot.lane.b32.xlu1 %v1994_v36, %s1855_s13 }
 0x733   : > { %730 = vperm.xlu1 %1721, %v2055_v23  }
 0x737   : > { %1723 = vset.pattern.permute.xlu1 %v1857_v24 }
 0x738   : > { %1049 = vperm.xlu1 %1723, %v2055_v23  }
 0x73c   : > { %1724 = vset.pattern.permute.xlu1 %v1859_v49 }
 0x7a7   : > { %v963_v25 = vpop.xlane.xlu1 %962 }
 0x7a8   : > { %v964_v26 = vsub.f32 %v960_v14, %v963_v25 }
 0x7aa   : > { %v965_v27 = vmul.f32 1.442695, %v964_v26 }
 0x7ab   : > { %v1132_v28 = vpop.permute.xlu1 %1131 }
 0x7ac   : > { %1742 = vpow2.f32 %v965_v27 }
 0x7af   : > { %v1130_v29 = vpop.permute.xlu1 %1129 }
 0x7b3   : > { %v731_v30 = vpop.permute.xlu1 %730 }
 0x7b4   : > { %v733_v31 = vmul.f32 %v731_v30, %v725_v9 }
 0x7b6   : > { %v1743_v32 = vpop.eup %1742  ;;  %1592 = vmatmul.mubr.msk.f32.vlgmr.msra.gmra.mrb[2].mxu0 %vm394_vm4, %v733_v31 }
 0x7b7   : > { %v967_v33 = vsel %vm470_vm5, %v1743_v32, 0.0  ;;  %1598 = vmatprep.mubr.msk.f32.mxu0 %vm1847_vm3, %v1846_v10  ;;  %1648 = vmatpush3.bf16.msra.mxu0 %v1647_v48  ;;  %v1050_v60 = vpop.permute.xlu1 %1049 }
 0x7b8   : > { %968 = vadd.xlane.f32.xlu0 %v967_v33  ;;  %1649 = vmatprep.subr.bf16.mxu0 %v1856_v21 }
 0x7ce   : > { %972 = vrot.lane.b32.xlu0 %v1996_v38, %s1851_s10 }
 0x845   : > { %v969_v34 = vpop.xlane.xlu0 %968 }
 0x846   : > { %1744 = vrcp.f32 %v969_v34 }
 0x849   : > { %v973_v35 = vpop.permute.xlu0 %972 }
 0x84a   : > { %1525 = vst.msk [vmem:[%s1999_s28 + $0x10] sm:$0xff] %vm394_vm4, %v973_v35  ;;  %1607 = vmatpush3.msra.mxu1 %v973_v35 }
 0x84b   : > { %1618 = vmatprep.subr.mxu1 %v1846_v10 }
 0x850   : > { %v1745_v36 = vpop.eup %1744 }
 0x851   : > { %v971_v37 = vmul.f32 %v1745_v36, %v1743_v32 }
 0x853   : > { %1609 = vmatmul.mubr.msk.f32.vlgmr.msra.gmra.mrb[10].mxu1 %vm470_vm5, %v971_v37 }
 0x854   : > { %1619 = vmatpush3.xpose.msk.msra.mxu1 %vm394_vm4, %v1132_v28  ;;  %1620 = vmatprep.mubr.msk.f32.mxu1 %vm1847_vm3, %v1846_v10 }
 0x857   : > { %1621 = vmatmul.mubr.msk.f32.vlgmr.msra.gmra.mrb[12].mxu1 %vm394_vm4, %v1130_v29 }
 0x926   : > { %v1044_v40 = vpop.f32.mrb[10].mxu1 }
 0x927   : > { %v1610_v41 = vpop.f32.mrb[11].mxu1  ;;  %v1052_v62 = vmul.f32 %v1050_v60, %v1044_v40 }
 0x92a   : > { %v1203_v42 = vpop.f32.mrb[12].mxu1 }
 0x92b   : > { %v1207_v43 = vmul.f32 0.25, %v1203_v42  ;;  %v1622_v44 = vpop.f32.mrb[13].mxu1 }
 0x92d   : > { %v1208_v45 = vsel %vm470_vm5, %v1207_v43, -inf }
 0x92e   : > { %1209 = vmax.xlane.f32.xlu0 %v1208_v45 }
 0x944   : > { %557 = vperm.xlu0 %1722, %v2055_v23  }
 0x948   : > { %1725 = vset.pattern.permute.xlu0 %v1859_v49 }
 0x9bb   : > { %v1210_v50 = vpop.xlane.xlu0 %1209 }
 0x9bc   : > { %v1211_v51 = vsub.f32 %v1207_v43, %v1210_v50 }
 0x9be   : > { %v1212_v52 = vmul.f32 1.442695, %v1211_v51 }
 0x9c0   : > { %1746 = vpow2.f32 %v1212_v52 }
 0x9c3   : > { %v558_v56 = vpop.permute.xlu0 %557 }
 0x9c4   : > { %v560_v58 = vmul.f32 %v558_v56, %v2024_v54 }
 0x9c6   : > { %1599 = vmatmul.mubr.msk.f32.vlgmr.msra.gmra.mrb[2].mxu0 %vm394_vm4, %v560_v58 }
 0x9c7   : > { %1651 = vmatpush3.bf16.msra.mxu0 %v1650_v57  ;;  %1615 = vmatprep.mubr.msk.f32.mxu0 %vm1847_vm3, %v1846_v10 }
 0x9c8   : > { %1623 = vmatprep.subr.mxu0 %v1846_v10 }
 0x9ca   : > { %v1747_v59 = vpop.eup %1746 }
 0x9cb   : > { %v1214_v61 = vsel %vm470_vm5, %v1747_v59, 0.0 }
 0x9cc   : > { %1215 = vadd.xlane.f32.xlu1 %v1214_v61 }
 0x9ce   : > { %1616 = vmatmul.mubr.msk.f32.vlgmr.msra.gmra.mrb[2].mxu0 %vm394_vm4, %v1052_v62 }
 0x9cf   : > { %1625 = vmatprep.mubr.msk.f32.mxu0 %vm1847_vm3, %v1846_v10 }
 0x9dd   : > { %1219 = vrot.lane.b32.xlu1 %v1996_v38, %s1855_s13  ;;  %v390_v38 = vld [vmem:[%s2200_s4 + $0x38] sm:$0xff]  ;;  %s1409_s13 = sshll.u32 %s1999_s28, 4  ;;  %s2115_s13 = int_to_ptr.vmem [resolvable:$true] %s1409_s13 }
 0x9de   : > { %v1653_v2 = vpack.c.bf16 %v390_v38, %v389_v0  ;;  %s1750_s10 = scalar_lea.vmem %s2115_s13, 512  ;;  %p1757_p0 = scmp.lt.s32.totalorder %s2115_s13, %s1755_s12 }
 0x9df   : > { %p1751_p11 = scmp.ne.s32.totalorder %s2115_s13, %s1750_s10 }
 0x9e1   : > { %1296 = vperm.xlu1 %1724, %v2055_v23   ;;  %p1752_p12 = pnand %p1751_p11, %p1937_p5 }
 0x9e3   : > { %p1753_p13 = pneg %p1752_p12 }
 0xa59   : > { %v1216_v54 = vpop.xlane.xlu1 %1215 }
 0xa5a   : > { %1748 = vrcp.f32 %v1216_v54 }
 0xa5d   : > { %v1220_v63 = vpop.permute.xlu1 %1219 }
 0xa5e   : > { %1530 = vst.msk [vmem:[%s1999_s28 + $0x18] sm:$0xff] %vm394_vm4, %v1220_v63  ;;  %1624 = vmatpush3.msra.mxu0 %v1220_v63  ;;  %s1756_s28 = scalar_lea.vmem %s1755_s12, 1024 }
 0xa5f   : > { %1652 = vmatprep.subr.bf16.mxu0 %v1856_v21  ;;  %p1758_p1 = scmp.lt.s32.totalorder %s1756_s28, %s1750_s10 }
 0xa61   : > { %v1297_v4 = vpop.permute.xlu1 %1296  ;;  %p1759_p2 = por %p1758_p1, %p1757_p0 }
 0xa63   : > { %p1760_p3 = pnand %p1759_p2, %p1753_p13 }
 0xa64   : > { %v1749_v1 = vpop.eup %1748 }
 0xa65   : > { %v1218_v3 = vmul.f32 %v1749_v1, %v1747_v59 }
 0xa67   : > { %1626 = vmatmul.mubr.msk.f32.vlgmr.msra.gmra.mrb[4].mxu0 %vm470_vm5, %v1218_v3 }
 0xa68   : > { %1654 = vmatpush3.bf16.msra.mxu0 %v1653_v2  ;;  %1632 = vmatprep.mubr.msk.f32.mxu0 %vm1847_vm3, %v1846_v10 }
 0xb3a   : > { %v1291_v5 = vpop.f32.mrb[4].mxu0 }
 0xb3b   : > { %v1299_v6 = vmul.f32 %v1297_v4, %v1291_v5  ;;  %v1627_v7 = vpop.f32.mrb[5].mxu0 }
 0xb3d   : > { %1633 = vmatmul.mubr.msk.f32.vlgmr.msra.gmra.mrb[2].mxu0 %vm394_vm4, %v1299_v6 }
 0xb3e   : > { %1763 = shalt.err (!%p1760_p3)
}
 0xb3f   : > { %s1764_s14 = scalar_lea.hbm %s2121_s29, 512  ;;  %s1768_s17 = scalar_lea.hbm %s2202_s6, 1024 }
 0xb40   : > { %p1765_p4 = scmp.ne.s32.totalorder %s2121_s29, %s1764_s14  ;;  %p1769_p9 = scmp.lt.u32.totalorder %s2121_s29, %s2202_s6 }
 0xb41   : > { %p1770_p10 = scmp.lt.u32.totalorder %s1768_s17, %s1764_s14  ;;  %p1772_p12 = scmp.lt.u32.totalorder %s1764_s14, %s2121_s29 }
 0xb42   : > { %p1766_p7 = pnand %p1765_p4, %p1937_p5 }
 0xb43   : > { %p1771_p11 = por %p1770_p10, %p1769_p9 }
 0xb44   : > { %p1767_p8 = pneg %p1766_p7 }
 0xb45   : > { %p1773_p13 = por %p1772_p12, %p1771_p11 }
 0xb47   : > { %p1774_p0 = pnand %p1773_p13, %p1767_p8 }
 0xb49   : > { %1777 = shalt.err (!%p1774_p0)
}
 0xb4a   : > { %s1861_s26 = smov 128   ;;  %s1862_s10 = smov 8  }
 0xb4b   : > { %1662 = dma.vmem_to_hbm [thread:$0]  (%p1937_p5), %s2115_s13, 512, %s2121_s29, %s1383_s9, %s1861_s26, %s1861_s26, %s1862_s10  }
 0xb4c   : > { %s1507_s11 = sshll.u32 %s1991_s19, 3  ;;  %s1533_s12 = sshll.u32 %s1920_s25, 7 }
 0xb4d   : > { %s246_s28 = scalar_lea.vmem [#allocation2], %s1507_s11  ;;  %s2152_s17 = scalar_lea.hbm %s2201_s5, %s1533_s12 }
 0xb4e   : > { %s1396_s14 = sshll.u32 %s246_s28, 4  ;;  %s1378_s18 = scalar_lea.sflag [#allocation3], %s1991_s19  ;;  %s2154_s14 = int_to_ptr.vmem [resolvable:$true] %s1396_s14 }
 0xb4f   : > { %s1778_s13 = scalar_lea.vmem %s2154_s14, 128  ;;  %s1863_s25 = smov [#allocation2]  }
 0xb50   : > { %p1779_p1 = scmp.ne.s32.totalorder %s2154_s14, %s1778_s13  ;;  %s1782_s29 = sshll.u32 %s1863_s25, 4  ;;  %s1783_s29 = int_to_ptr.vmem [resolvable:$false] %s1782_s29 }
 0xb51   : > { %s1784_s9 = scalar_lea.vmem %s1783_s29, 256  ;;  %p1785_p4 = scmp.lt.s32.totalorder %s2154_s14, %s1783_s29 }
 0xb52   : > { %p1780_p2 = pnand %p1779_p1, %p1937_p5  ;;  %p1786_p7 = scmp.lt.s32.totalorder %s1784_s9, %s1778_s13 }
 0xb54   : > { %p1781_p3 = pneg %p1780_p2  ;;  %p1787_p8 = por %p1786_p7, %p1785_p4 }
 0xb56   : > { %p1788_p9 = pnand %p1787_p8, %p1781_p3 }
 0xc10   : > { %v1369_v10 = vpop.f32.mrb[2].mxu0 }
 0xc11   : > { %1376 = vst.msk [vmem:[%s246_s28] sm:$0xff] %vm260_vm0, %v1369_v10  ;;  %v1634_v8 = vpop.f32.mrb[3].mxu0 }
 0xc12   : > { %1791 = shalt.err (!%p1788_p9)
}
 0xc13   : > { %s1792_s19 = scalar_lea.hbm %s2152_s17, 128  ;;  %s1796_s10 = scalar_lea.hbm %s2201_s5, 256 }
 0xc14   : > { %p1793_p10 = scmp.ne.s32.totalorder %s2152_s17, %s1792_s19  ;;  %p1797_p13 = scmp.lt.u32.totalorder %s2152_s17, %s2201_s5 }
 0xc15   : > { %p1798_p0 = scmp.lt.u32.totalorder %s1796_s10, %s1792_s19  ;;  %p1800_p2 = scmp.lt.u32.totalorder %s1792_s19, %s2152_s17 }
 0xc16   : > { %p1794_p11 = pnand %p1793_p10, %p1937_p5 }
 0xc17   : > { %p1799_p1 = por %p1798_p0, %p1797_p13 }
 0xc18   : > { %p1795_p12 = pneg %p1794_p11 }
 0xc19   : > { %p1801_p3 = por %p1800_p2, %p1799_p1 }
 0xc1b   : > { %p1802_p4 = pnand %p1801_p3, %p1795_p12 }
 0xc1d   : > { %1805 = shalt.err (!%p1802_p4)
}
 0xc1e   : > { %1661 = dma.vmem_to_hbm [thread:$0]  (%p1937_p5), %s2154_s14, 128, %s2152_s17, %s1378_s18  }
 0xc1f PF: > { %p1672_p7 = scmp.ge.s32.totalorder %s1844_s24, 2  ;;  %s1424_s28 = sand.u32 1, %s1832_s21  }
 0xc20   : > { %s1425_s15 = scalar_lea.sflag [#allocation3], %s1424_s28 }
 0xc21   : > { %p1666_p8 = pnand %p1672_p7, %p1941_p6 }
 0xc23   : > { %1823 = dma.done.wait (!%p1666_p8), %s1425_s15, 128  }
 0xc24   : > { %1825 = vsyncadd (!%p1666_p8), %s1425_s15, 4294967168  ;;  %s1434_s16 = scalar_lea.sflag [#allocation5], %s1424_s28 }
 0xc25   : > { %1827 = dma.done.wait (!%p1666_p8), %s1434_s16, 512  }
 0xc26   : > { %1829 = vsyncadd (!%p1666_p8), %s1434_s16, 4294966784  ;;  %p20_p5 = scmp.ge.s32.totalorder %s1924_s27, 4   ;;  %s2205_s21 = smov %s1836_s22 }
 0xc27   : > { %s2206_s22 = smov %s1840_s23  ;;  %s2207_s23 = smov %s1935_s30 }
 0xc28   : > { %s2208_s24 = smov %s1924_s27  ;;  %22 = sbr.rel (!%p20_p5) target bundleno = 5 (0x5), region = 95 }
 0xc2f   :  { %1439 = vsyncpa [#allocation3], 1 }
 0xc30   :  { %1441 = vsyncpa [#allocation3 + $0x1], 1 }
 0xc31   :  { %1442 = vsyncpa [#allocation5], 1 }
 0xc32   :  { %1444 = vsyncpa [#allocation5 + $0x1], 1 }

</bundles_post_ra>
